<compile_context>
chip_gen: v7x
topology: tpu7x:2x2x1
jax: 0.10.0
libtpu: 0.0.40
codegen_flags: <defaults>
</compile_context>

<pallas_src>
import functools

import jax
import jax.numpy as jnp
from jax import lax
from jax.experimental import pallas as pl
from jax.experimental.pallas import tpu as pltpu

CHAR_EMB_SIZE = 50
CONV_KERNEL = 5
DROPOUT_P = 0.3   # training-only; eval-mode forward is identity
LANE = 128


def _round_up(x, m):
    return (x + m - 1) // m * m


def _char_cnn_highway_kernel(ids_ref, wfold_ref, bconv_ref, whw_ref, bhw_ref,
                             o_ref, *, V, K, E, l_out):
    """Fused (table-folded) char-CNN + ReLU + max-pool + Highway.

    ids_ref   : (TN, L)     int32     char ids for TN words (TN % 8 == 0)
    wfold_ref : (K*V, E)    bfloat16  char table folded into im2col conv weight
    bconv_ref : (1, E)      float32   conv bias
    whw_ref   : (E, 2E)     bfloat16  [w_proj | w_gate]
    bhw_ref   : (1, 2E)     float32   [b_proj | b_gate]
    o_ref     : (TN, E_pad) float32   lane-dense output (first E cols valid)
    """
    ids = ids_ref[...]
    tn, L = ids.shape
    wfold = wfold_ref[...]
    b_conv = bconv_ref[...]

    # Per-character-position one-hots: bool -> bf16 directly (exact 0/1),
    # computed once per position and reused by all K window offsets.
    iota_v = lax.broadcasted_iota(jnp.int32, (tn, V), 1)
    pos_onehot = [
        (ids[:, p:p + 1] == iota_v).astype(jnp.bfloat16) for p in range(L)
    ]

    # Conv1d + ReLU + max-pool over time, one window position per step.
    # Rows stay (tn, .) (sublane-aligned) so the pool is a pure-VPU running max.
    best = None
    for t in range(l_out):
        oh = jnp.concatenate(pos_onehot[t:t + K], axis=-1)        # (tn, K*V) bf16
        conv = jnp.dot(oh, wfold, preferred_element_type=jnp.float32) + b_conv
        cur = jnp.maximum(conv, 0.0)                               # ReLU
        best = cur if best is None else jnp.maximum(best, cur)     # max-pool

    # Highway: fused [proj | gate] matmul.
    h = jnp.dot(best.astype(jnp.bfloat16), whw_ref[...],
                preferred_element_type=jnp.float32) + bhw_ref[...]
    x_proj = jnp.maximum(h[:, :E], 0.0)
    x_gate = jax.nn.sigmoid(h[:, E:])
    out = x_gate * x_proj + (1.0 - x_gate) * best                  # (tn, E) f32

    # Lane-dense store: pad to the full 128-lane out block (unmasked stores).
    e_pad = o_ref.shape[-1]
    if e_pad > E:
        out = jnp.pad(out, ((0, 0), (0, e_pad - E)))
    o_ref[...] = out


def init_params(key, char_vocab_size, word_embed_size):
    """Deterministic synthetic parameters (shapes match the PyTorch module)."""
    k_emb, k_wc, k_bc, k_wp, k_bp, k_wg, k_bg = jax.random.split(key, 7)
    E, C, K = word_embed_size, CHAR_EMB_SIZE, CONV_KERNEL
    return {
        "char_embedding": jax.random.normal(k_emb, (char_vocab_size, C), jnp.float32),
        "w_conv": 0.1 * jax.random.normal(k_wc, (E, C, K), jnp.float32),  # PyTorch Conv1d layout
        "b_conv": 0.1 * jax.random.normal(k_bc, (E,), jnp.float32),
        "w_proj": 0.1 * jax.random.normal(k_wp, (E, E), jnp.float32),     # (in, out)
        "b_proj": 0.1 * jax.random.normal(k_bp, (E,), jnp.float32),
        "w_gate": 0.1 * jax.random.normal(k_wg, (E, E), jnp.float32),     # (in, out)
        "b_gate": 0.1 * jax.random.normal(k_bg, (E,), jnp.float32),
    }


def model_embeddings_forward(input_ids, params, *, tile_n=1024):
    """input_ids: (sentence_length, batch_size, max_word_length) int32
       returns:   (sentence_length, batch_size, word_embed_size) float32"""
    S, B, L = input_ids.shape
    V, C = params["char_embedding"].shape
    E = params["w_proj"].shape[1]
    K = params["w_conv"].shape[2]
    assert L >= K, "max_word_length must be >= conv kernel size"
    l_out = L - K + 1
    N = S * B

    # ---- tile sizing --------------------------------------------------------
    tile_n = _round_up(max(8, min(tile_n, 2048)), 8)
    if N > 8:
        # Keep >= 2 grid steps when there is enough work (v7x has 2 TensorCores).
        tile_n = min(tile_n, _round_up(pl.cdiv(N, 2), 8))
    tile_n = min(tile_n, _round_up(N, 8))
    N_pad = _round_up(N, tile_n)

    # ---- glue (wrapper-side, once) ------------------------------------------
    ids = input_ids.reshape(N, L).astype(jnp.int32)
    if N_pad != N:
        ids = jnp.pad(ids, ((0, N_pad - N), (0, 0)))   # padded words -> char id 0

    # Fold the char-embedding table into the im2col conv weight (f32 math,
    # single bf16 cast):  wfold[k*V + v, e] = sum_c table[v, c] * w_conv[e, c, k]
    wfold = jnp.einsum("vc,eck->kve", params["char_embedding"], params["w_conv"])
    wfold = wfold.reshape(K * V, E).astype(jnp.bfloat16)
    b_conv = params["b_conv"].reshape(1, E).astype(jnp.float32)
    w_hw = jnp.concatenate([params["w_proj"], params["w_gate"]], axis=1)
    w_hw = w_hw.astype(jnp.bfloat16)                                        # (E, 2E)
    b_hw = jnp.concatenate([params["b_proj"], params["b_gate"]]).reshape(1, 2 * E)
    b_hw = b_hw.astype(jnp.float32)

    E_pad = _round_up(E, LANE)   # lane-dense output block width

    kernel = functools.partial(_char_cnn_highway_kernel,
                               V=V, K=K, E=E, l_out=l_out)

    out = pl.pallas_call(
        kernel,
        out_shape=jax.ShapeDtypeStruct((N_pad, E_pad), jnp.float32),
        grid_spec=pltpu.PrefetchScalarGridSpec(
            num_scalar_prefetch=0,
            grid=(N_pad // tile_n,),
            in_specs=[
                pl.BlockSpec((tile_n, L), lambda i: (i, 0)),       # char ids
                pl.BlockSpec((K * V, E), lambda i: (0, 0)),        # folded conv W
                pl.BlockSpec((1, E), lambda i: (0, 0)),            # conv bias
                pl.BlockSpec((E, 2 * E), lambda i: (0, 0)),        # [proj|gate] W
                pl.BlockSpec((1, 2 * E), lambda i: (0, 0)),        # [proj|gate] b
            ],
            out_specs=pl.BlockSpec((tile_n, E_pad), lambda i: (i, 0)),
        ),
        compiler_params=pltpu.CompilerParams(
            dimension_semantics=("parallel",),
            vmem_limit_bytes=48 * 1024 * 1024,
        ),
    )(ids, wfold, b_conv, w_hw, b_hw)

    # TODO(synk): nn.Dropout(p=0.3) is a no-op in eval mode; training-mode
    # stochastic dropout (pltpu.prng_*) intentionally omitted for determinism.
    return out[:N, :E].reshape(S, B, E)


def _reference_forward(input_ids, params):
    """Pure-JAX f32 reference with the same semantics (for tolerance check)."""
    S, B, L = input_ids.shape
    E = params["w_proj"].shape[1]
    K = params["w_conv"].shape[2]
    l_out = L - K + 1
    x = params["char_embedding"][input_ids.reshape(S * B, L)]          # (N, L, C)
    convs = [jnp.einsum("nkc,eck->ne", x[:, t:t + K, :], params["w_conv"])
             for t in range(l_out)]
    conv = jnp.stack(convs, axis=1) + params["b_conv"]                 # (N, l_out, E)
    x_conv = jnp.max(jax.nn.relu(conv), axis=1)                        # (N, E)
    x_proj = jax.nn.relu(x_conv @ params["w_proj"] + params["b_proj"])
    x_gate = jax.nn.sigmoid(x_conv @ params["w_gate"] + params["b_gate"])
    out = x_gate * x_proj + (1.0 - x_gate) * x_conv
    return out.reshape(S, B, E)


if __name__ == "__main__":
    key = jax.random.PRNGKey(0)
    k_params, k_ids = jax.random.split(key)

    sentence_length, batch_size, max_word_length = 4, 2, 12
    char_vocab_size, word_embed_size = 30, 32

    params = init_params(k_params, char_vocab_size, word_embed_size)
    input_ids = jax.random.randint(
        k_ids, (sentence_length, batch_size, max_word_length),
        0, char_vocab_size, dtype=jnp.int32)

    out = model_embeddings_forward(input_ids, params)
    out = jax.block_until_ready(out)

    assert out.shape == (sentence_length, batch_size, word_embed_size)
    assert out.dtype == jnp.float32
    assert bool(jnp.all(jnp.isfinite(out)))

    ref = _reference_forward(input_ids, params)
    max_err = float(jnp.max(jnp.abs(out - ref)))
    assert bool(jnp.allclose(out, ref, rtol=5e-2, atol=5e-2)), max_err
    print("KERNEL_OK")
</pallas_src>

<mosaic_0001>
module attributes {stable_mosaic.version = 11 : i64} {
  func.func @_char_cnn_highway_kernel(%arg0: i32, %arg1: memref<8x12xi32, #tpu.memory_space<vmem>>, %arg2: memref<150x32xbf16, #tpu.memory_space<vmem>>, %arg3: memref<1x32xf32, #tpu.memory_space<vmem>>, %arg4: memref<32x64xbf16, #tpu.memory_space<vmem>>, %arg5: memref<1x64xf32, #tpu.memory_space<vmem>>, %arg6: memref<8x128xf32, #tpu.memory_space<vmem>>) attributes {dimension_semantics = [#tpu.dimension_semantics<parallel>], iteration_bounds = array<i64: 1>, scalar_prefetch = 0 : i64, scratch_operands = 0 : i64, tpu.core_type = #tpu.core_type<tc>, window_params = [{transform_indices = @transform_0, window_bounds = array<i64: 8, 12>}, {pipeline_mode = #tpu.pipeline_mode<synchronous>, transform_indices = @transform_1, window_bounds = array<i64: 150, 32>}, {pipeline_mode = #tpu.pipeline_mode<synchronous>, transform_indices = @transform_2, window_bounds = array<i64: 1, 32>}, {pipeline_mode = #tpu.pipeline_mode<synchronous>, transform_indices = @transform_3, window_bounds = array<i64: 32, 64>}, {pipeline_mode = #tpu.pipeline_mode<synchronous>, transform_indices = @transform_4, window_bounds = array<i64: 1, 64>}, {transform_indices = @transform_5, window_bounds = array<i64: 8, 128>}]} {
    %c0 = arith.constant 0 : index
    %c0_0 = arith.constant 0 : index
    %0 = vector.load %arg1[%c0, %c0_0] : memref<8x12xi32, #tpu.memory_space<vmem>>, vector<8x12xi32>
    %c0_1 = arith.constant 0 : index
    %c0_2 = arith.constant 0 : index
    %1 = vector.load %arg2[%c0_1, %c0_2] : memref<150x32xbf16, #tpu.memory_space<vmem>>, vector<150x32xbf16>
    %c0_3 = arith.constant 0 : index
    %c0_4 = arith.constant 0 : index
    %2 = vector.load %arg3[%c0_3, %c0_4] : memref<1x32xf32, #tpu.memory_space<vmem>>, vector<1x32xf32>
    %3 = tpu.iota {dimensions = array<i32: 1>} : vector<8x30xi32>
    %4 = vector.extract_strided_slice %0 {offsets = [0, 0], sizes = [8, 1], strides = [1, 1]} : vector<8x12xi32> to vector<8x1xi32>
    %5 = vector.broadcast %4 : vector<8x1xi32> to vector<8x30xi32>
    %6 = arith.cmpi eq, %5, %3 : vector<8x30xi32>
    %7 = arith.extui %6 : vector<8x30xi1> to vector<8x30xi32>
    %8 = arith.sitofp %7 : vector<8x30xi32> to vector<8x30xf32>
    %9 = arith.truncf %8 : vector<8x30xf32> to vector<8x30xbf16>
    %10 = vector.extract_strided_slice %0 {offsets = [0, 1], sizes = [8, 1], strides = [1, 1]} : vector<8x12xi32> to vector<8x1xi32>
    %11 = vector.broadcast %10 : vector<8x1xi32> to vector<8x30xi32>
    %12 = arith.cmpi eq, %11, %3 : vector<8x30xi32>
    %13 = arith.extui %12 : vector<8x30xi1> to vector<8x30xi32>
    %14 = arith.sitofp %13 : vector<8x30xi32> to vector<8x30xf32>
    %15 = arith.truncf %14 : vector<8x30xf32> to vector<8x30xbf16>
    %16 = vector.extract_strided_slice %0 {offsets = [0, 2], sizes = [8, 1], strides = [1, 1]} : vector<8x12xi32> to vector<8x1xi32>
    %17 = vector.broadcast %16 : vector<8x1xi32> to vector<8x30xi32>
    %18 = arith.cmpi eq, %17, %3 : vector<8x30xi32>
    %19 = arith.extui %18 : vector<8x30xi1> to vector<8x30xi32>
    %20 = arith.sitofp %19 : vector<8x30xi32> to vector<8x30xf32>
    %21 = arith.truncf %20 : vector<8x30xf32> to vector<8x30xbf16>
    %22 = vector.extract_strided_slice %0 {offsets = [0, 3], sizes = [8, 1], strides = [1, 1]} : vector<8x12xi32> to vector<8x1xi32>
    %23 = vector.broadcast %22 : vector<8x1xi32> to vector<8x30xi32>
    %24 = arith.cmpi eq, %23, %3 : vector<8x30xi32>
    %25 = arith.extui %24 : vector<8x30xi1> to vector<8x30xi32>
    %26 = arith.sitofp %25 : vector<8x30xi32> to vector<8x30xf32>
    %27 = arith.truncf %26 : vector<8x30xf32> to vector<8x30xbf16>
    %28 = vector.extract_strided_slice %0 {offsets = [0, 4], sizes = [8, 1], strides = [1, 1]} : vector<8x12xi32> to vector<8x1xi32>
    %29 = vector.broadcast %28 : vector<8x1xi32> to vector<8x30xi32>
    %30 = arith.cmpi eq, %29, %3 : vector<8x30xi32>
    %31 = arith.extui %30 : vector<8x30xi1> to vector<8x30xi32>
    %32 = arith.sitofp %31 : vector<8x30xi32> to vector<8x30xf32>
    %33 = arith.truncf %32 : vector<8x30xf32> to vector<8x30xbf16>
    %34 = vector.extract_strided_slice %0 {offsets = [0, 5], sizes = [8, 1], strides = [1, 1]} : vector<8x12xi32> to vector<8x1xi32>
    %35 = vector.broadcast %34 : vector<8x1xi32> to vector<8x30xi32>
    %36 = arith.cmpi eq, %35, %3 : vector<8x30xi32>
    %37 = arith.extui %36 : vector<8x30xi1> to vector<8x30xi32>
    %38 = arith.sitofp %37 : vector<8x30xi32> to vector<8x30xf32>
    %39 = arith.truncf %38 : vector<8x30xf32> to vector<8x30xbf16>
    %40 = vector.extract_strided_slice %0 {offsets = [0, 6], sizes = [8, 1], strides = [1, 1]} : vector<8x12xi32> to vector<8x1xi32>
    %41 = vector.broadcast %40 : vector<8x1xi32> to vector<8x30xi32>
    %42 = arith.cmpi eq, %41, %3 : vector<8x30xi32>
    %43 = arith.extui %42 : vector<8x30xi1> to vector<8x30xi32>
    %44 = arith.sitofp %43 : vector<8x30xi32> to vector<8x30xf32>
    %45 = arith.truncf %44 : vector<8x30xf32> to vector<8x30xbf16>
    %46 = vector.extract_strided_slice %0 {offsets = [0, 7], sizes = [8, 1], strides = [1, 1]} : vector<8x12xi32> to vector<8x1xi32>
    %47 = vector.broadcast %46 : vector<8x1xi32> to vector<8x30xi32>
    %48 = arith.cmpi eq, %47, %3 : vector<8x30xi32>
    %49 = arith.extui %48 : vector<8x30xi1> to vector<8x30xi32>
    %50 = arith.sitofp %49 : vector<8x30xi32> to vector<8x30xf32>
    %51 = arith.truncf %50 : vector<8x30xf32> to vector<8x30xbf16>
    %52 = vector.extract_strided_slice %0 {offsets = [0, 8], sizes = [8, 1], strides = [1, 1]} : vector<8x12xi32> to vector<8x1xi32>
    %53 = vector.broadcast %52 : vector<8x1xi32> to vector<8x30xi32>
    %54 = arith.cmpi eq, %53, %3 : vector<8x30xi32>
    %55 = arith.extui %54 : vector<8x30xi1> to vector<8x30xi32>
    %56 = arith.sitofp %55 : vector<8x30xi32> to vector<8x30xf32>
    %57 = arith.truncf %56 : vector<8x30xf32> to vector<8x30xbf16>
    %58 = vector.extract_strided_slice %0 {offsets = [0, 9], sizes = [8, 1], strides = [1, 1]} : vector<8x12xi32> to vector<8x1xi32>
    %59 = vector.broadcast %58 : vector<8x1xi32> to vector<8x30xi32>
    %60 = arith.cmpi eq, %59, %3 : vector<8x30xi32>
    %61 = arith.extui %60 : vector<8x30xi1> to vector<8x30xi32>
    %62 = arith.sitofp %61 : vector<8x30xi32> to vector<8x30xf32>
    %63 = arith.truncf %62 : vector<8x30xf32> to vector<8x30xbf16>
    %64 = vector.extract_strided_slice %0 {offsets = [0, 10], sizes = [8, 1], strides = [1, 1]} : vector<8x12xi32> to vector<8x1xi32>
    %65 = vector.broadcast %64 : vector<8x1xi32> to vector<8x30xi32>
    %66 = arith.cmpi eq, %65, %3 : vector<8x30xi32>
    %67 = arith.extui %66 : vector<8x30xi1> to vector<8x30xi32>
    %68 = arith.sitofp %67 : vector<8x30xi32> to vector<8x30xf32>
    %69 = arith.truncf %68 : vector<8x30xf32> to vector<8x30xbf16>
    %70 = vector.extract_strided_slice %0 {offsets = [0, 11], sizes = [8, 1], strides = [1, 1]} : vector<8x12xi32> to vector<8x1xi32>
    %71 = vector.broadcast %70 : vector<8x1xi32> to vector<8x30xi32>
    %72 = arith.cmpi eq, %71, %3 : vector<8x30xi32>
    %73 = arith.extui %72 : vector<8x30xi1> to vector<8x30xi32>
    %74 = arith.sitofp %73 : vector<8x30xi32> to vector<8x30xf32>
    %75 = arith.truncf %74 : vector<8x30xf32> to vector<8x30xbf16>
    %76 = tpu.concatenate %9, %15, %21, %27, %33 in 1 : vector<8x30xbf16>, vector<8x30xbf16>, vector<8x30xbf16>, vector<8x30xbf16>, vector<8x30xbf16> -> vector<8x150xbf16>
    %cst = arith.constant dense<0.000000e+00> : vector<8x32xf32>
    %77 = tpu.matmul %76, %1, %cst {dimension_numbers = #tpu.dot_dimension_numbers<[1], [0], [0], [1], [0, 0, 1, 1], [], []>} : vector<8x150xbf16>, vector<150x32xbf16>, vector<8x32xf32> -> vector<8x32xf32>
    %78 = vector.broadcast %2 : vector<1x32xf32> to vector<8x32xf32>
    %79 = arith.addf %77, %78 : vector<8x32xf32>
    %cst_5 = arith.constant 0.000000e+00 : f32
    %80 = vector.broadcast %cst_5 : f32 to vector<8x32xf32>
    %81 = arith.maximumf %79, %80 : vector<8x32xf32>
    %82 = tpu.concatenate %15, %21, %27, %33, %39 in 1 : vector<8x30xbf16>, vector<8x30xbf16>, vector<8x30xbf16>, vector<8x30xbf16>, vector<8x30xbf16> -> vector<8x150xbf16>
    %cst_6 = arith.constant dense<0.000000e+00> : vector<8x32xf32>
    %83 = tpu.matmul %82, %1, %cst_6 {dimension_numbers = #tpu.dot_dimension_numbers<[1], [0], [0], [1], [0, 0, 1, 1], [], []>} : vector<8x150xbf16>, vector<150x32xbf16>, vector<8x32xf32> -> vector<8x32xf32>
    %84 = vector.broadcast %2 : vector<1x32xf32> to vector<8x32xf32>
    %85 = arith.addf %83, %84 : vector<8x32xf32>
    %cst_7 = arith.constant 0.000000e+00 : f32
    %86 = vector.broadcast %cst_7 : f32 to vector<8x32xf32>
    %87 = arith.maximumf %85, %86 : vector<8x32xf32>
    %88 = arith.maximumf %81, %87 : vector<8x32xf32>
    %89 = tpu.concatenate %21, %27, %33, %39, %45 in 1 : vector<8x30xbf16>, vector<8x30xbf16>, vector<8x30xbf16>, vector<8x30xbf16>, vector<8x30xbf16> -> vector<8x150xbf16>
    %cst_8 = arith.constant dense<0.000000e+00> : vector<8x32xf32>
    %90 = tpu.matmul %89, %1, %cst_8 {dimension_numbers = #tpu.dot_dimension_numbers<[1], [0], [0], [1], [0, 0, 1, 1], [], []>} : vector<8x150xbf16>, vector<150x32xbf16>, vector<8x32xf32> -> vector<8x32xf32>
    %91 = vector.broadcast %2 : vector<1x32xf32> to vector<8x32xf32>
    %92 = arith.addf %90, %91 : vector<8x32xf32>
    %cst_9 = arith.constant 0.000000e+00 : f32
    %93 = vector.broadcast %cst_9 : f32 to vector<8x32xf32>
    %94 = arith.maximumf %92, %93 : vector<8x32xf32>
    %95 = arith.maximumf %88, %94 : vector<8x32xf32>
    %96 = tpu.concatenate %27, %33, %39, %45, %51 in 1 : vector<8x30xbf16>, vector<8x30xbf16>, vector<8x30xbf16>, vector<8x30xbf16>, vector<8x30xbf16> -> vector<8x150xbf16>
    %cst_10 = arith.constant dense<0.000000e+00> : vector<8x32xf32>
    %97 = tpu.matmul %96, %1, %cst_10 {dimension_numbers = #tpu.dot_dimension_numbers<[1], [0], [0], [1], [0, 0, 1, 1], [], []>} : vector<8x150xbf16>, vector<150x32xbf16>, vector<8x32xf32> -> vector<8x32xf32>
    %98 = vector.broadcast %2 : vector<1x32xf32> to vector<8x32xf32>
    %99 = arith.addf %97, %98 : vector<8x32xf32>
    %cst_11 = arith.constant 0.000000e+00 : f32
    %100 = vector.broadcast %cst_11 : f32 to vector<8x32xf32>
    %101 = arith.maximumf %99, %100 : vector<8x32xf32>
    %102 = arith.maximumf %95, %101 : vector<8x32xf32>
    %103 = tpu.concatenate %33, %39, %45, %51, %57 in 1 : vector<8x30xbf16>, vector<8x30xbf16>, vector<8x30xbf16>, vector<8x30xbf16>, vector<8x30xbf16> -> vector<8x150xbf16>
    %cst_12 = arith.constant dense<0.000000e+00> : vector<8x32xf32>
    %104 = tpu.matmul %103, %1, %cst_12 {dimension_numbers = #tpu.dot_dimension_numbers<[1], [0], [0], [1], [0, 0, 1, 1], [], []>} : vector<8x150xbf16>, vector<150x32xbf16>, vector<8x32xf32> -> vector<8x32xf32>
    %105 = vector.broadcast %2 : vector<1x32xf32> to vector<8x32xf32>
    %106 = arith.addf %104, %105 : vector<8x32xf32>
    %cst_13 = arith.constant 0.000000e+00 : f32
    %107 = vector.broadcast %cst_13 : f32 to vector<8x32xf32>
    %108 = arith.maximumf %106, %107 : vector<8x32xf32>
    %109 = arith.maximumf %102, %108 : vector<8x32xf32>
    %110 = tpu.concatenate %39, %45, %51, %57, %63 in 1 : vector<8x30xbf16>, vector<8x30xbf16>, vector<8x30xbf16>, vector<8x30xbf16>, vector<8x30xbf16> -> vector<8x150xbf16>
    %cst_14 = arith.constant dense<0.000000e+00> : vector<8x32xf32>
    %111 = tpu.matmul %110, %1, %cst_14 {dimension_numbers = #tpu.dot_dimension_numbers<[1], [0], [0], [1], [0, 0, 1, 1], [], []>} : vector<8x150xbf16>, vector<150x32xbf16>, vector<8x32xf32> -> vector<8x32xf32>
    %112 = vector.broadcast %2 : vector<1x32xf32> to vector<8x32xf32>
    %113 = arith.addf %111, %112 : vector<8x32xf32>
    %cst_15 = arith.constant 0.000000e+00 : f32
    %114 = vector.broadcast %cst_15 : f32 to vector<8x32xf32>
    %115 = arith.maximumf %113, %114 : vector<8x32xf32>
    %116 = arith.maximumf %109, %115 : vector<8x32xf32>
    %117 = tpu.concatenate %45, %51, %57, %63, %69 in 1 : vector<8x30xbf16>, vector<8x30xbf16>, vector<8x30xbf16>, vector<8x30xbf16>, vector<8x30xbf16> -> vector<8x150xbf16>
    %cst_16 = arith.constant dense<0.000000e+00> : vector<8x32xf32>
    %118 = tpu.matmul %117, %1, %cst_16 {dimension_numbers = #tpu.dot_dimension_numbers<[1], [0], [0], [1], [0, 0, 1, 1], [], []>} : vector<8x150xbf16>, vector<150x32xbf16>, vector<8x32xf32> -> vector<8x32xf32>
    %119 = vector.broadcast %2 : vector<1x32xf32> to vector<8x32xf32>
    %120 = arith.addf %118, %119 : vector<8x32xf32>
    %cst_17 = arith.constant 0.000000e+00 : f32
    %121 = vector.broadcast %cst_17 : f32 to vector<8x32xf32>
    %122 = arith.maximumf %120, %121 : vector<8x32xf32>
    %123 = arith.maximumf %116, %122 : vector<8x32xf32>
    %124 = tpu.concatenate %51, %57, %63, %69, %75 in 1 : vector<8x30xbf16>, vector<8x30xbf16>, vector<8x30xbf16>, vector<8x30xbf16>, vector<8x30xbf16> -> vector<8x150xbf16>
    %cst_18 = arith.constant dense<0.000000e+00> : vector<8x32xf32>
    %125 = tpu.matmul %124, %1, %cst_18 {dimension_numbers = #tpu.dot_dimension_numbers<[1], [0], [0], [1], [0, 0, 1, 1], [], []>} : vector<8x150xbf16>, vector<150x32xbf16>, vector<8x32xf32> -> vector<8x32xf32>
    %126 = vector.broadcast %2 : vector<1x32xf32> to vector<8x32xf32>
    %127 = arith.addf %125, %126 : vector<8x32xf32>
    %cst_19 = arith.constant 0.000000e+00 : f32
    %128 = vector.broadcast %cst_19 : f32 to vector<8x32xf32>
    %129 = arith.maximumf %127, %128 : vector<8x32xf32>
    %130 = arith.maximumf %123, %129 : vector<8x32xf32>
    %131 = arith.truncf %130 : vector<8x32xf32> to vector<8x32xbf16>
    %c0_20 = arith.constant 0 : index
    %c0_21 = arith.constant 0 : index
    %132 = vector.load %arg4[%c0_20, %c0_21] : memref<32x64xbf16, #tpu.memory_space<vmem>>, vector<32x64xbf16>
    %cst_22 = arith.constant dense<0.000000e+00> : vector<8x64xf32>
    %133 = tpu.matmul %131, %132, %cst_22 {dimension_numbers = #tpu.dot_dimension_numbers<[1], [0], [0], [1], [0, 0, 1, 1], [], []>} : vector<8x32xbf16>, vector<32x64xbf16>, vector<8x64xf32> -> vector<8x64xf32>
    %c0_23 = arith.constant 0 : index
    %c0_24 = arith.constant 0 : index
    %134 = vector.load %arg5[%c0_23, %c0_24] : memref<1x64xf32, #tpu.memory_space<vmem>>, vector<1x64xf32>
    %135 = vector.broadcast %134 : vector<1x64xf32> to vector<8x64xf32>
    %136 = arith.addf %133, %135 : vector<8x64xf32>
    %137 = vector.extract_strided_slice %136 {offsets = [0, 0], sizes = [8, 32], strides = [1, 1]} : vector<8x64xf32> to vector<8x32xf32>
    %cst_25 = arith.constant 0.000000e+00 : f32
    %138 = vector.broadcast %cst_25 : f32 to vector<8x32xf32>
    %139 = arith.maximumf %137, %138 : vector<8x32xf32>
    %140 = vector.extract_strided_slice %136 {offsets = [0, 32], sizes = [8, 32], strides = [1, 1]} : vector<8x64xf32> to vector<8x32xf32>
    %141 = arith.negf %140 : vector<8x32xf32>
    %142 = math.exp %141 : vector<8x32xf32>
    %cst_26 = arith.constant 1.000000e+00 : f32
    %143 = vector.broadcast %cst_26 : f32 to vector<8x32xf32>
    %144 = arith.addf %143, %142 : vector<8x32xf32>
    %145 = arith.divf %143, %144 : vector<8x32xf32>
    %146 = arith.mulf %145, %139 : vector<8x32xf32>
    %cst_27 = arith.constant 1.000000e+00 : f32
    %147 = vector.broadcast %cst_27 : f32 to vector<8x32xf32>
    %148 = arith.subf %147, %145 : vector<8x32xf32>
    %149 = arith.mulf %148, %130 : vector<8x32xf32>
    %150 = arith.addf %146, %149 : vector<8x32xf32>
    %c0_i32 = arith.constant 0 : i32
    %151 = arith.sitofp %c0_i32 : i32 to f32
    %152 = vector.broadcast %151 : f32 to vector<8x96xf32>
    %153 = tpu.concatenate %150, %152 in 1 : vector<8x32xf32>, vector<8x96xf32> -> vector<8x128xf32>
    %c0_28 = arith.constant 0 : index
    %c0_29 = arith.constant 0 : index
    %154 = vector.load %arg6[%c0_28, %c0_29] : memref<8x128xf32, #tpu.memory_space<vmem>>, vector<8x128xf32>
    tpu.vector_store %arg6[%c0_28, %c0_29], %153 {strides = array<i32>} : memref<8x128xf32, #tpu.memory_space<vmem>>, vector<8x128xf32>,
    return
  }
  func.func @transform_0(%arg0: i32) -> (i32, i32) {
    %c0_i32 = arith.constant 0 : i32
    %c0_i32_0 = arith.constant 0 : i32
    return %arg0, %c0_i32 : i32, i32
  }
  func.func @transform_1(%arg0: i32) -> (i32, i32) {
    %c0_i32 = arith.constant 0 : i32
    %c0_i32_0 = arith.constant 0 : i32
    %c0_i32_1 = arith.constant 0 : i32
    return %c0_i32, %c0_i32_0 : i32, i32
  }
  func.func @transform_2(%arg0: i32) -> (i32, i32) {
    %c0_i32 = arith.constant 0 : i32
    %c0_i32_0 = arith.constant 0 : i32
    %c0_i32_1 = arith.constant 0 : i32
    return %c0_i32, %c0_i32_0 : i32, i32
  }
  func.func @transform_3(%arg0: i32) -> (i32, i32) {
    %c0_i32 = arith.constant 0 : i32
    %c0_i32_0 = arith.constant 0 : i32
    %c0_i32_1 = arith.constant 0 : i32
    return %c0_i32, %c0_i32_0 : i32, i32
  }
  func.func @transform_4(%arg0: i32) -> (i32, i32) {
    %c0_i32 = arith.constant 0 : i32
    %c0_i32_0 = arith.constant 0 : i32
    %c0_i32_1 = arith.constant 0 : i32
    return %c0_i32, %c0_i32_0 : i32, i32
  }
  func.func @transform_5(%arg0: i32) -> (i32, i32) {
    %c0_i32 = arith.constant 0 : i32
    %c0_i32_0 = arith.constant 0 : i32
    return %arg0, %c0_i32 : i32, i32
  }
}

</mosaic_0001>

<bundles_post_ra>
// kernel: tpu_custom_call.1
= control target key start
LH: loop header
LB: loop body
LE: loop exit
PB: predicated region body
PF: predicated region fallthrough
CT: control target
= control target key end

     0   :  { %v934_v1 = vmov 1   ;;  %v935_v2 = vmov 3   ;;  %v936_v3 = vmov 0   ;;  %v937_v4 = vmov 2   ;;  %s1383_s0 = inlined_call_operand.vmem [shape: s32[8,12], index: 0, kind: input, shape index: {}]   ;;  %s1384_s1 = inlined_call_operand.vmem [shape: bf16[150,32], index: 1, kind: input, shape index: {}]   ;;  %s1385_s2 = inlined_call_operand.vmem [shape: f32[1,32], index: 2, kind: input, shape index: {}]   ;;  %s1386_s3 = inlined_call_operand.vmem [shape: bf16[32,64], index: 3, kind: input, shape index: {}]   ;;  %s1387_s4 = inlined_call_operand.vmem [shape: f32[1,64], index: 4, kind: input, shape index: {}]   ;;  %s1388_s5 = inlined_call_operand.hbm [shape: f32[8,128], index: 5, kind: output, shape index: {}]  }
   0x1   :  { %v988_v0 = vld [vmem:[%s1383_s0] sm:$0xff]  ;;  %882 = vset.pattern.permute.xlu0 %v934_v1  ;;  %884 = vset.pattern.permute.xlu1 %v935_v2  ;;  %v938_v5 = vmov 4  }
   0x2   :  { %53 = vperm.xlu0 %882, %v988_v0   ;;  %67 = vperm.xlu1 %884, %v988_v0  }
   0x3   :  { %225 = vmatprep.subr.bf16.mxu0 %v936_v3  ;;  %287 = vmatprep.subr.bf16.mxu1 %v936_v3 }
   0x6   :  { %883 = vset.pattern.permute.xlu0 %v937_v4  ;;  %885 = vset.pattern.permute.xlu1 %v938_v5 }
   0x7   :  { %60 = vperm.xlu0 %883, %v988_v0   ;;  %74 = vperm.xlu1 %885, %v988_v0  }
   0x8   :  { %10 = vsyncpa [#allocation3], 0  ;;  %v939_v6 = vmov 5   ;;  %v940_v7 = vmov 6   ;;  %v941_v8 = vmov 7   ;;  %v942_v9 = vmov 8  }
   0x9   :  { %v943_v10 = vmov 9   ;;  %v1004_v11 = vld [vmem:[%s1384_s1] sm:$0xff]   ;;  %v1010_v12 = vld [vmem:[%s1384_s1 + $0x8] sm:$0xff]   ;;  %v1019_v13 = vld [vmem:[%s1384_s1 + $0x10] sm:$0xff]   ;;  %v43_v20 = vlaneseq  ;;  %vm221_vm0 = vcmask 1042432   ;;  %v944_v26 = vmov 0.0  }
   0xa   :  { %226 = vmatpush1.bf16.msra.mxu0 %v1004_v11  ;;  %288 = vmatpush1.bf16.msra.mxu1 %v1004_v11  ;;  %v1028_v14 = vld [vmem:[%s1384_s1 + $0x18] sm:$0xff]   ;;  %v1037_v15 = vld [vmem:[%s1384_s1 + $0x20] sm:$0xff]   ;;  %v1046_v16 = vld [vmem:[%s1384_s1 + $0x28] sm:$0xff]   ;;  %s946_s14 = smov 90   ;;  %s947_s15 = smov 60   ;;  %v949_v42 = vmov 11  }
   0xb   :  { %886 = vset.pattern.permute.xlu1 %v939_v6  ;;  %887 = vset.pattern.permute.xlu0 %v940_v7  ;;  %v1055_v17 = vld [vmem:[%s1384_s1 + $0x30] sm:$0xff]   ;;  %v1064_v18 = vld [vmem:[%s1384_s1 + $0x38] sm:$0xff]   ;;  %v1076_v19 = vld [vmem:[%s1384_s1 + $0x40] sm:$0xff]   ;;  %v1087_v23 = vand.u32 127, %v43_v20  ;;  %s948_s16 = smov 120   ;;  %v950_v45 = vmov 10  }
   0xc   :  { %81 = vperm.xlu1 %886, %v988_v0   ;;  %88 = vperm.xlu0 %887, %v988_v0   ;;  %v903_v21 = vld [vmem:[%s1384_s1 + $0x48] ss:$0 sps:$4 sm:$0x77]   ;;  %s945_s1 = smov 30   ;;  %vm141_vm9 = vcmask 244736   ;;  %vm145_vm10 = vcmask 490496  }
   0xd   :  { %227 = vmatprep.subr.bf16.mxu0 %v936_v3  ;;  %289 = vmatprep.subr.bf16.mxu1 %v936_v3  ;;  %v1085_v22 = vsel %vm221_vm0, %v903_v21, 0  ;;  %vm148_vm11 = vcmask 736256   ;;  %vm218_vm12 = vcmask 179200   ;;  %vm151_vm13 = vcmask 982016   ;;  %s954_s23 = smov [#allocation2]  }
   0xe   :  { %228 = vmatpush1.bf16.msra.mxu0 %v1010_v12  ;;  %290 = vmatpush1.bf16.msra.mxu1 %v1010_v12  ;;  %s806_s24 = sshll.u32 %s954_s23, 4  ;;  %s807_s24 = int_to_ptr.vmem [resolvable:$true] %s806_s24 }
   0xf   :  { %229 = vmatprep.subr.bf16.mxu0 %v936_v3  ;;  %291 = vmatprep.subr.bf16.mxu1 %v936_v3  ;;  %s910_s25 = scalar_lea.vmem %s807_s24, 128  ;;  %p915_p1 = scmp.lt.s32.totalorder %s807_s24, %s807_s24 }
  0x10   :  { %888 = vset.pattern.permute.xlu1 %v941_v8  ;;  %890 = vset.pattern.permute.xlu0 %v942_v9  ;;  %p911_p0 = scmp.ne.s32.totalorder %s807_s24, %s910_s25  ;;  %p916_p2 = scmp.lt.s32.totalorder %s910_s25, %s910_s25 }
  0x11   :  { %95 = vperm.xlu1 %888, %v988_v0  }
  0x12   :  { %230 = vmatpush1.bf16.msra.mxu0 %v1019_v13  ;;  %292 = vmatpush1.bf16.msra.mxu1 %v1019_v13  ;;  %p917_p3 = por %p916_p2, %p915_p1 }
  0x13   :  { %231 = vmatprep.subr.bf16.mxu0 %v936_v3  ;;  %293 = vmatprep.subr.bf16.mxu1 %v936_v3 }
  0x14   :  { %p918_p4 = pnand %p917_p3, %p911_p0 }
  0x15   :  { %889 = vset.pattern.permute.xlu1 %v936_v3 }
  0x16   :  { %46 = vperm.xlu1 %889, %v988_v0   ;;  %232 = vmatpush1.bf16.msra.mxu0 %v1028_v14 }
  0x17   :  { %294 = vmatpush1.bf16.msra.mxu1 %v1028_v14  ;;  %233 = vmatprep.subr.bf16.mxu0 %v936_v3 }
  0x18   :  { %295 = vmatprep.subr.bf16.mxu1 %v936_v3 }
  0x1a   :  { %891 = vset.pattern.permute.xlu1 %v943_v10  ;;  %234 = vmatpush1.bf16.msra.mxu0 %v1037_v15 }
  0x1b   :  { %296 = vmatpush1.bf16.msra.mxu1 %v1037_v15  ;;  %235 = vmatprep.subr.bf16.mxu0 %v936_v3 }
  0x1c   :  { %297 = vmatprep.subr.bf16.mxu1 %v936_v3 }
  0x1e   :  { %236 = vmatpush1.bf16.msra.mxu0 %v1046_v16 }
  0x1f   :  { %298 = vmatpush1.bf16.msra.mxu1 %v1046_v16  ;;  %237 = vmatprep.subr.bf16.mxu0 %v936_v3 }
  0x20   :  { %299 = vmatprep.subr.bf16.mxu1 %v936_v3 }
  0x22   :  { %238 = vmatpush1.bf16.msra.mxu0 %v1055_v17 }
  0x23   :  { %300 = vmatpush1.bf16.msra.mxu1 %v1055_v17  ;;  %239 = vmatprep.subr.bf16.mxu0 %v936_v3 }
  0x24   :  { %301 = vmatprep.subr.bf16.mxu1 %v936_v3 }
  0x26   :  { %240 = vmatpush1.bf16.msra.mxu0 %v1064_v18 }
  0x27   :  { %302 = vmatpush1.bf16.msra.mxu1 %v1064_v18  ;;  %241 = vmatprep.subr.bf16.mxu0 %v936_v3 }
  0x28   :  { %303 = vmatprep.subr.bf16.mxu1 %v936_v3 }
  0x2a   :  { %242 = vmatpush1.bf16.msra.mxu0 %v1076_v19 }
  0x2b   :  { %304 = vmatpush1.bf16.msra.mxu1 %v1076_v19  ;;  %243 = vmatprep.subr.bf16.mxu0 %v936_v3 }
  0x2c   :  { %305 = vmatprep.subr.bf16.mxu1 %v936_v3 }
  0x2e   :  { %244 = vmatpush1.bf16.msra.mxu0 %v1085_v22 }
  0x2f   :  { %306 = vmatpush1.bf16.msra.mxu1 %v1085_v22  ;;  %350 = vmatprep.subr.bf16.mxu0 %v936_v3 }
  0x30   :  { %413 = vmatprep.subr.bf16.mxu1 %v936_v3 }
  0x81   :  { %v54_v24 = vpop.permute.xlu0 %53  ;;  %v68_v25 = vpop.permute.xlu1 %67 }
  0x82   :  { %vm55_vm1 = vcmp.eq.s32.totalorder %v54_v24, %v1087_v23  ;;  %vm69_vm2 = vcmp.eq.s32.totalorder %v68_v25, %v1087_v23 }
  0x83   :  { %v815_v27 = vsel %vm55_vm1, 1.0, %v944_v26  ;;  %v817_v28 = vsel %vm69_vm2, 1.0, %v944_v26  ;;  %vm951_vm2 = vmmov 0  }
  0x84   :  { %v1097_v29 = vpack.c.bf16 %v815_v27, %v815_v27  ;;  %v1099_v30 = vpack.c.bf16 %v817_v28, %v817_v28 }
  0x86   :  { %130 = vrot.lane.b32.xlu0 %v1097_v29, %s945_s1  ;;  %v61_v31 = vpop.permute.xlu0 %60  ;;  %v75_v32 = vpop.permute.xlu1 %74 }
  0x87   :  { %vm62_vm3 = vcmp.eq.s32.totalorder %v61_v31, %v1087_v23  ;;  %vm76_vm4 = vcmp.eq.s32.totalorder %v75_v32, %v1087_v23 }
  0x88   :  { %v816_v33 = vsel %vm62_vm3, 1.0, %v944_v26  ;;  %v818_v34 = vsel %vm76_vm4, 1.0, %v944_v26  ;;  %vm731_vm3 = vcmask 261120  }
  0x89   :  { %v1107_v35 = vpack.c.bf16 %v816_v33, %v816_v33  ;;  %v1109_v36 = vpack.c.bf16 %v818_v34, %v818_v34 }
  0x8a   :  { %136 = vrot.lane.b32.xlu0 %v1099_v30, %s946_s14 }
  0x8b   :  { %133 = vrot.lane.b32.xlu1 %v1107_v35, %s947_s15  ;;  %v82_v37 = vpop.permute.xlu1 %81  ;;  %v89_v41 = vpop.permute.xlu0 %88 }
  0x8c   :  { %vm83_vm5 = vcmp.eq.s32.totalorder %v82_v37, %v1087_v23  ;;  %vm90_vm7 = vcmp.eq.s32.totalorder %v89_v41, %v1087_v23 }
  0x8d   :  { %v819_v38 = vsel %vm83_vm5, 1.0, %v944_v26  ;;  %v820_v44 = vsel %vm90_vm7, 1.0, %v944_v26 }
  0x8e   :  { %139 = vrot.lane.b32.xlu0 %v1109_v36, %s948_s16  ;;  %v1123_v39 = vpack.c.bf16 %v819_v38, %v819_v38  ;;  %v1145_v47 = vpack.c.bf16 %v820_v44, %v820_v44 }
  0x8f   :  { %266 = vrot.lane.b32.xlu1 %v1107_v35, %s945_s1 }
  0x90   :  { %v96_v40 = vpop.permute.xlu1 %95 }
  0x91   :  { %vm97_vm6 = vcmp.eq.s32.totalorder %v96_v40, %v1087_v23 }
  0x92   :  { %270 = vrot.lane.b32.xlu0 %v1109_v36, %s946_s14  ;;  %v821_v43 = vsel %vm97_vm6, 1.0, %v944_v26 }
  0x93   :  { %268 = vrot.lane.b32.xlu1 %v1099_v30, %s947_s15  ;;  %v1143_v46 = vpack.c.bf16 %v821_v43, %v821_v43 }
  0x95   :  { %v47_v48 = vpop.permute.xlu1 %46 }
  0x96   :  { %102 = vperm.xlu0 %890, %v988_v0   ;;  %vm48_vm8 = vcmp.eq.s32.totalorder %v47_v48, %v1087_v23 }
  0x97   :  { %273 = vrot.lane.b32.xlu1 %v1123_v39, %s948_s16  ;;  %v814_v49 = vsel %vm48_vm8, 1.0, %v944_v26 }
  0x98   :  { %v51_v51 = vpack.c.bf16 %v814_v49, %v814_v49 }
  0x9a   :  { %331 = vrot.lane.b32.xlu0 %v1109_v36, %s947_s15 }
  0x9b   :  { %109 = vperm.xlu1 %891, %v988_v0   ;;  %893 = vset.pattern.permute.xlu0 %v949_v42 }
  0x9e   :  { %392 = vrot.lane.b32.xlu0 %v1109_v36, %s945_s1 }
  0x9f   :  { %329 = vrot.lane.b32.xlu1 %v1099_v30, %s945_s1 }
  0xa0   :  { %892 = vset.pattern.permute.xlu1 %v950_v45 }
  0xa2   :  { %394 = vrot.lane.b32.xlu0 %v1123_v39, %s947_s15 }
  0xa3   :  { %333 = vrot.lane.b32.xlu1 %v1123_v39, %s946_s14 }
  0xa6   :  { %399 = vrot.lane.b32.xlu0 %v1143_v46, %s948_s16 }
  0xa7   :  { %336 = vrot.lane.b32.xlu1 %v1145_v47, %s948_s16 }
  0xaa   :  { %123 = vperm.xlu0 %893, %v988_v0  }
  0xab   :  { %396 = vrot.lane.b32.xlu1 %v1145_v47, %s946_s14 }
  0xae   :  { %459 = vrot.lane.b32.xlu0 %v1143_v46, %s946_s14 }
  0xaf   :  { %116 = vperm.xlu1 %892, %v988_v0  }
  0xb3   :  { %455 = vrot.lane.b32.xlu1 %v1123_v39, %s945_s1 }
  0xb7   :  { %457 = vrot.lane.b32.xlu1 %v1145_v47, %s947_s15 }
  0xbb   :  { %518 = vrot.lane.b32.xlu1 %v1145_v47, %s945_s1 }
  0xbf   :  { %520 = vrot.lane.b32.xlu1 %v1143_v46, %s947_s15 }
  0xf8   :  { %v131_v50 = vpop.permute.xlu0 %130 }
  0xf9   :  { %v144_v53 = vsel %vm141_vm9, %v51_v51, %v131_v50 }
  0xfc   :  { %v137_v52 = vpop.permute.xlu0 %136 }
  0xfd   :  { %v134_v54 = vpop.permute.xlu1 %133 }
  0xfe   :  { %v147_v55 = vsel %vm145_vm10, %v144_v53, %v134_v54 }
  0xff   :  { %v150_v56 = vsel %vm148_vm11, %v147_v55, %v137_v52 }
 0x100   :  { %v140_v57 = vpop.permute.xlu0 %139 }
 0x101   :  { %v267_v58 = vpop.permute.xlu1 %266  ;;  %837 = vmatprep.mubr.msk.bf16.mxu0 %vm218_vm12, %v140_v57  ;;  %v153_v59 = vsel %vm151_vm13, %v150_v56, %v140_v57 }
 0x102   :  { %258 = vmatmul.mubr.bf16.vlgmr.msra.gmra.mrb[0].mxu0 %v153_v59  ;;  %v277_v60 = vsel %vm141_vm9, %v1097_v29, %v267_v58 }
 0x103   :  { %351 = vmatpush1.bf16.msra.mxu0 %v1004_v11 }
 0x104   :  { %352 = vmatprep.subr.bf16.mxu0 %v936_v3  ;;  %v271_v63 = vpop.permute.xlu0 %270 }
 0x105   :  { %v269_v61 = vpop.permute.xlu1 %268 }
 0x106   :  { %v279_v62 = vsel %vm145_vm10, %v277_v60, %v269_v61 }
 0x107   :  { %353 = vmatpush1.bf16.msra.mxu0 %v1010_v12  ;;  %v281_v1 = vsel %vm148_vm11, %v279_v62, %v271_v63 }
 0x108   :  { %354 = vmatprep.subr.bf16.mxu0 %v936_v3 }
 0x109   :  { %v274_v0 = vpop.permute.xlu1 %273 }
 0x10a   :  { %838 = vmatprep.mubr.msk.bf16.mxu1 %vm218_vm12, %v274_v0  ;;  %v283_v2 = vsel %vm151_vm13, %v281_v1, %v274_v0 }
 0x10b   :  { %355 = vmatpush1.bf16.msra.mxu0 %v1019_v13  ;;  %320 = vmatmul.mubr.bf16.vlgmr.msra.gmra.mrb[0].mxu1 %v283_v2 }
 0x10c   :  { %414 = vmatpush1.bf16.msra.mxu1 %v1004_v11  ;;  %356 = vmatprep.subr.bf16.mxu0 %v936_v3 }
 0x10d   :  { %415 = vmatprep.subr.bf16.mxu1 %v936_v3 }
 0x10f   :  { %357 = vmatpush1.bf16.msra.mxu0 %v1028_v14 }
 0x110   :  { %416 = vmatpush1.bf16.msra.mxu1 %v1010_v12  ;;  %358 = vmatprep.subr.bf16.mxu0 %v936_v3 }
 0x111   :  { %417 = vmatprep.subr.bf16.mxu1 %v936_v3 }
 0x113   :  { %359 = vmatpush1.bf16.msra.mxu0 %v1037_v15 }
 0x114   :  { %418 = vmatpush1.bf16.msra.mxu1 %v1019_v13  ;;  %360 = vmatprep.subr.bf16.mxu0 %v936_v3 }
 0x115   :  { %v103_v4 = vpop.permute.xlu0 %102  ;;  %419 = vmatprep.subr.bf16.mxu1 %v936_v3 }
 0x116   :  { %vm104_vm14 = vcmp.eq.s32.totalorder %v103_v4, %v1087_v23 }
 0x117   :  { %v822_v5 = vsel %vm104_vm14, 1.0, %v944_v26  ;;  %361 = vmatpush1.bf16.msra.mxu0 %v1046_v16 }
 0x118   :  { %v107_v6 = vpack.c.bf16 %v822_v5, %v822_v5  ;;  %420 = vmatpush1.bf16.msra.mxu1 %v1028_v14  ;;  %362 = vmatprep.subr.bf16.mxu0 %v936_v3 }
 0x119   :  { %v332_v7 = vpop.permute.xlu0 %331  ;;  %421 = vmatprep.subr.bf16.mxu1 %v936_v3 }
 0x11a   :  { %v110_v8 = vpop.permute.xlu1 %109  ;;  %462 = vrot.lane.b32.xlu0 %v107_v6, %s948_s16 }
 0x11b   :  { %vm111_vm15 = vcmp.eq.s32.totalorder %v110_v8, %v1087_v23  ;;  %363 = vmatpush1.bf16.msra.mxu0 %v1055_v17 }
 0x11c   :  { %v823_v9 = vsel %vm111_vm15, 1.0, %v944_v26  ;;  %422 = vmatpush1.bf16.msra.mxu1 %v1037_v15  ;;  %364 = vmatprep.subr.bf16.mxu0 %v936_v3 }
 0x11d   :  { %v114_v10 = vpack.c.bf16 %v823_v9, %v823_v9  ;;  %v393_v20 = vpop.permute.xlu0 %392  ;;  %423 = vmatprep.subr.bf16.mxu1 %v936_v3 }
 0x11e   :  { %v330_v21 = vpop.permute.xlu1 %329  ;;  %522 = vrot.lane.b32.xlu0 %v107_v6, %s946_s14  ;;  %v403_v40 = vsel %vm141_vm9, %v1099_v30, %v393_v20 }
 0x11f   :  { %365 = vmatpush1.bf16.msra.mxu0 %v1064_v18  ;;  %525 = vrot.lane.b32.xlu1 %v114_v10, %s948_s16  ;;  %v340_v25 = vsel %vm141_vm9, %v1107_v35, %v330_v21 }
 0x120   :  { %424 = vmatpush1.bf16.msra.mxu1 %v1046_v16  ;;  %366 = vmatprep.subr.bf16.mxu0 %v936_v3  ;;  %v342_v28 = vsel %vm145_vm10, %v340_v25, %v332_v7 }
 0x121   :  { %v395_v24 = vpop.permute.xlu0 %394  ;;  %425 = vmatprep.subr.bf16.mxu1 %v936_v3 }
 0x122   :  { %v334_v27 = vpop.permute.xlu1 %333  ;;  %581 = vrot.lane.b32.xlu0 %v1143_v46, %s945_s1  ;;  %v405_v41 = vsel %vm145_vm10, %v403_v40, %v395_v24 }
 0x123   :  { %367 = vmatpush1.bf16.msra.mxu0 %v1076_v19  ;;  %583 = vrot.lane.b32.xlu1 %v107_v6, %s947_s15  ;;  %v344_v31 = vsel %vm148_vm11, %v342_v28, %v334_v27 }
 0x124   :  { %426 = vmatpush1.bf16.msra.mxu1 %v1055_v17  ;;  %368 = vmatprep.subr.bf16.mxu0 %v936_v3 }
 0x125   :  { %427 = vmatprep.subr.bf16.mxu1 %v936_v3  ;;  %v400_v29 = vpop.permute.xlu0 %399 }
 0x126   :  { %v337_v32 = vpop.permute.xlu1 %336  ;;  %585 = vrot.lane.b32.xlu0 %v114_v10, %s946_s14  ;;  %840 = vmatprep.mubr.msk.bf16.mxu1 %vm218_vm12, %v400_v29 }
 0x127   :  { %v346_v33 = vsel %vm151_vm13, %v344_v31, %v337_v32  ;;  %369 = vmatpush1.bf16.msra.mxu0 %v1085_v22  ;;  %644 = vrot.lane.b32.xlu1 %v107_v6, %s945_s1 }
 0x128   :  { %428 = vmatpush1.bf16.msra.mxu1 %v1064_v18  ;;  %839 = vmatprep.mubr.msk.bf16.mxu0 %vm218_vm12, %v337_v32 }
 0x129   :  { %429 = vmatprep.subr.bf16.mxu1 %v936_v3  ;;  %v124_v34 = vpop.permute.xlu0 %123  ;;  %476 = vmatprep.subr.bf16.mxu0 %v936_v3 }
 0x12a   :  { %383 = vmatmul.mubr.bf16.vlgmr.msra.gmra.mrb[4].mxu0 %v346_v33  ;;  %v397_v35 = vpop.permute.xlu1 %396  ;;  %vm125_vm0 = vcmp.eq.s32.totalorder %v124_v34, %v1087_v23 }
 0x12b   :  { %646 = vrot.lane.b32.xlu1 %v114_v10, %s947_s15  ;;  %v825_v37 = vsel %vm125_vm0, 1.0, %v944_v26  ;;  %477 = vmatpush1.bf16.msra.mxu0 %v1004_v11  ;;  %v407_v43 = vsel %vm148_vm11, %v405_v41, %v397_v35 }
 0x12c   :  { %430 = vmatpush1.bf16.msra.mxu1 %v1076_v19  ;;  %v128_v38 = vpack.c.bf16 %v825_v37, %v825_v37  ;;  %478 = vmatprep.subr.bf16.mxu0 %v936_v3  ;;  %v409_v45 = vsel %vm151_vm13, %v407_v43, %v400_v29 }
 0x12d   :  { %431 = vmatprep.subr.bf16.mxu1 %v936_v3  ;;  %v460_v50 = vpop.permute.xlu0 %459 }
 0x12e   :  { %v117_v42 = vpop.permute.xlu1 %116 }
 0x12f   :  { %vm118_vm1 = vcmp.eq.s32.totalorder %v117_v42, %v1087_v23  ;;  %651 = vrot.lane.b32.xlu1 %v128_v38, %s948_s16  ;;  %479 = vmatpush1.bf16.msra.mxu0 %v1010_v12 }
 0x130   :  { %v824_v44 = vsel %vm118_vm1, 1.0, %v944_v26  ;;  %432 = vmatpush1.bf16.msra.mxu1 %v1085_v22  ;;  %480 = vmatprep.subr.bf16.mxu0 %v936_v3 }
 0x131   :  { %v121_v30 = vpack.c.bf16 %v824_v44, %v824_v44  ;;  %539 = vmatprep.subr.bf16.mxu1 %v936_v3  ;;  %v904_v44 = vld [vmem:[%s1386_s3] sm:$0xff]  }
 0x132   :  { %v456_v23 = vpop.permute.xlu1 %455 }
 0x133   :  { %446 = vmatmul.mubr.bf16.vlgmr.msra.gmra.mrb[4].mxu1 %v409_v45  ;;  %588 = vrot.lane.b32.xlu0 %v121_v30, %s948_s16  ;;  %v466_v51 = vsel %vm141_vm9, %v1109_v36, %v456_v23 }
 0x134   :  { %540 = vmatpush1.bf16.msra.mxu1 %v1004_v11  ;;  %481 = vmatpush1.bf16.msra.mxu0 %v1019_v13 }
 0x135   :  { %541 = vmatprep.subr.bf16.mxu1 %v936_v3  ;;  %482 = vmatprep.subr.bf16.mxu0 %v936_v3 }
 0x136   :  { %v458_v48 = vpop.permute.xlu1 %457 }
 0x137   :  { %648 = vrot.lane.b32.xlu0 %v121_v30, %s946_s14  ;;  %v468_v52 = vsel %vm145_vm10, %v466_v51, %v458_v48  ;;  %v905_v30 = vld [vmem:[%s1386_s3 + $0x8] sm:$0xff]   ;;  %s952_s3 = smov 32  }
 0x138   :  { %542 = vmatpush1.bf16.msra.mxu1 %v1010_v12  ;;  %483 = vmatpush1.bf16.msra.mxu0 %v1028_v14  ;;  %v470_v53 = vsel %vm148_vm11, %v468_v52, %v460_v50 }
 0x139   :  { %543 = vmatprep.subr.bf16.mxu1 %v936_v3  ;;  %484 = vmatprep.subr.bf16.mxu0 %v936_v3 }
 0x13a   :  { %v519_v49 = vpop.permute.xlu1 %518 }
 0x13b   :  { %v529_v57 = vsel %vm141_vm9, %v1123_v39, %v519_v49 }
 0x13c   :  { %544 = vmatpush1.bf16.msra.mxu1 %v1019_v13  ;;  %485 = vmatpush1.bf16.msra.mxu0 %v1037_v15 }
 0x13d   :  { %545 = vmatprep.subr.bf16.mxu1 %v936_v3  ;;  %486 = vmatprep.subr.bf16.mxu0 %v936_v3 }
 0x13e   :  { %v521_v55 = vpop.permute.xlu1 %520 }
 0x13f   :  { %v531_v58 = vsel %vm145_vm10, %v529_v57, %v521_v55 }
 0x140   :  { %546 = vmatpush1.bf16.msra.mxu1 %v1028_v14  ;;  %487 = vmatpush1.bf16.msra.mxu0 %v1046_v16 }
 0x141   :  { %547 = vmatprep.subr.bf16.mxu1 %v936_v3  ;;  %488 = vmatprep.subr.bf16.mxu0 %v936_v3 }
 0x144   :  { %548 = vmatpush1.bf16.msra.mxu1 %v1037_v15  ;;  %489 = vmatpush1.bf16.msra.mxu0 %v1055_v17 }
 0x145   :  { %549 = vmatprep.subr.bf16.mxu1 %v936_v3  ;;  %490 = vmatprep.subr.bf16.mxu0 %v936_v3 }
 0x148   :  { %550 = vmatpush1.bf16.msra.mxu1 %v1046_v16  ;;  %491 = vmatpush1.bf16.msra.mxu0 %v1064_v18 }
 0x149   :  { %551 = vmatprep.subr.bf16.mxu1 %v936_v3  ;;  %492 = vmatprep.subr.bf16.mxu0 %v936_v3 }
 0x14c   :  { %552 = vmatpush1.bf16.msra.mxu1 %v1055_v17  ;;  %493 = vmatpush1.bf16.msra.mxu0 %v1076_v19 }
 0x14d   :  { %553 = vmatprep.subr.bf16.mxu1 %v936_v3  ;;  %494 = vmatprep.subr.bf16.mxu0 %v936_v3 }
 0x150   :  { %554 = vmatpush1.bf16.msra.mxu1 %v1064_v18  ;;  %495 = vmatpush1.bf16.msra.mxu0 %v1085_v22 }
 0x151   :  { %555 = vmatprep.subr.bf16.mxu1 %v936_v3  ;;  %602 = vmatprep.subr.bf16.mxu0 %v936_v3 }
 0x154   :  { %556 = vmatpush1.bf16.msra.mxu1 %v1076_v19 }
 0x155   :  { %557 = vmatprep.subr.bf16.mxu1 %v936_v3 }
 0x158   :  { %558 = vmatpush1.bf16.msra.mxu1 %v1085_v22 }
 0x159   :  { %665 = vmatprep.subr.bf16.mxu1 %v936_v3 }
 0x18c   :  { %v463_v54 = vpop.permute.xlu0 %462 }
 0x18d   :  { %v472_v56 = vsel %vm151_vm13, %v470_v53, %v463_v54  ;;  %841 = vmatprep.mubr.msk.bf16.mxu0 %vm218_vm12, %v463_v54 }
 0x18e   :  { %509 = vmatmul.mubr.bf16.vlgmr.msra.gmra.mrb[8].mxu0 %v472_v56 }
 0x18f   :  { %603 = vmatpush1.bf16.msra.mxu0 %v1004_v11 }
 0x190   :  { %v523_v59 = vpop.permute.xlu0 %522  ;;  %604 = vmatprep.subr.bf16.mxu0 %v936_v3 }
 0x191   :  { %v533_v36 = vsel %vm148_vm11, %v531_v58, %v523_v59  ;;  %v526_v60 = vpop.permute.xlu1 %525 }
 0x192   :  { %v535_v61 = vsel %vm151_vm13, %v533_v36, %v526_v60  ;;  %842 = vmatprep.mubr.msk.bf16.mxu1 %vm218_vm12, %v526_v60 }
 0x193   :  { %605 = vmatpush1.bf16.msra.mxu0 %v1010_v12  ;;  %572 = vmatmul.mubr.bf16.vlgmr.msra.gmra.mrb[8].mxu1 %v535_v61 }
 0x194   :  { %666 = vmatpush1.bf16.msra.mxu1 %v1004_v11  ;;  %606 = vmatprep.subr.bf16.mxu0 %v936_v3  ;;  %v582_v63 = vpop.permute.xlu0 %581 }
 0x195   :  { %v584_v39 = vpop.permute.xlu1 %583  ;;  %667 = vmatprep.subr.bf16.mxu1 %v936_v3 }
 0x197   :  { %607 = vmatpush1.bf16.msra.mxu0 %v1019_v13 }
 0x198   :  { %668 = vmatpush1.bf16.msra.mxu1 %v1010_v12  ;;  %608 = vmatprep.subr.bf16.mxu0 %v936_v3  ;;  %v586_v12 = vpop.permute.xlu0 %585 }
 0x199   :  { %v645_v62 = vpop.permute.xlu1 %644  ;;  %669 = vmatprep.subr.bf16.mxu1 %v936_v3 }
 0x19b   :  { %609 = vmatpush1.bf16.msra.mxu0 %v1028_v14 }
 0x19c   :  { %670 = vmatpush1.bf16.msra.mxu1 %v1019_v13  ;;  %610 = vmatprep.subr.bf16.mxu0 %v936_v3 }
 0x19d   :  { %v647_v11 = vpop.permute.xlu1 %646  ;;  %671 = vmatprep.subr.bf16.mxu1 %v936_v3 }
 0x19f   :  { %611 = vmatpush1.bf16.msra.mxu0 %v1037_v15 }
 0x1a0   :  { %672 = vmatpush1.bf16.msra.mxu1 %v1028_v14  ;;  %612 = vmatprep.subr.bf16.mxu0 %v936_v3  ;;  %v592_v14 = vsel %vm141_vm9, %v1145_v47, %v582_v63  ;;  %v655_v47 = vsel %vm141_vm9, %v1143_v46, %v645_v62  ;;  %v826_v46 = vld [vmem:[%s1385_s2] ss:$0 sm:$0xff] }
 0x1a1   :  { %673 = vmatprep.subr.bf16.mxu1 %v936_v3  ;;  %v652_v0 = vpop.permute.xlu1 %651  ;;  %v657_v1 = vsel %vm145_vm10, %v655_v47, %v647_v11  ;;  %v845_v47 = vld [vmem:[%s1387_s4] ss:$0 sm:$0xff]  ;;  %s953_s4 = smov 96  }
 0x1a2   :  { %844 = vmatprep.mubr.msk.bf16.mxu1 %vm218_vm12, %v652_v0 }
 0x1a3   :  { %613 = vmatpush1.bf16.msra.mxu0 %v1046_v16 }
 0x1a4   :  { %674 = vmatpush1.bf16.msra.mxu1 %v1037_v15  ;;  %614 = vmatprep.subr.bf16.mxu0 %v936_v3  ;;  %v594_v15 = vsel %vm145_vm10, %v592_v14, %v584_v39 }
 0x1a5   :  { %v589_v13 = vpop.permute.xlu0 %588  ;;  %675 = vmatprep.subr.bf16.mxu1 %v936_v3 }
 0x1a6   :  { %843 = vmatprep.mubr.msk.bf16.mxu0 %vm218_vm12, %v589_v13 }
 0x1a7   :  { %615 = vmatpush1.bf16.msra.mxu0 %v1055_v17 }
 0x1a8   :  { %676 = vmatpush1.bf16.msra.mxu1 %v1046_v16  ;;  %616 = vmatprep.subr.bf16.mxu0 %v936_v3  ;;  %v596_v16 = vsel %vm148_vm11, %v594_v15, %v586_v12 }
 0x1a9   :  { %677 = vmatprep.subr.bf16.mxu1 %v936_v3 }
 0x1ab   :  { %617 = vmatpush1.bf16.msra.mxu0 %v1064_v18 }
 0x1ac   :  { %678 = vmatpush1.bf16.msra.mxu1 %v1055_v17  ;;  %618 = vmatprep.subr.bf16.mxu0 %v936_v3  ;;  %v649_v17 = vpop.permute.xlu0 %648 }
 0x1ad   :  { %679 = vmatprep.subr.bf16.mxu1 %v936_v3  ;;  %v659_v2 = vsel %vm148_vm11, %v657_v1, %v649_v17 }
 0x1ae   :  { %v661_v4 = vsel %vm151_vm13, %v659_v2, %v652_v0 }
 0x1af   :  { %619 = vmatpush1.bf16.msra.mxu0 %v1076_v19 }
 0x1b0   :  { %680 = vmatpush1.bf16.msra.mxu1 %v1064_v18  ;;  %620 = vmatprep.subr.bf16.mxu0 %v936_v3  ;;  %v598_v18 = vsel %vm151_vm13, %v596_v16, %v589_v13 }
 0x1b1   :  { %681 = vmatprep.subr.bf16.mxu1 %v936_v3 }
 0x1b3   :  { %621 = vmatpush1.bf16.msra.mxu0 %v1085_v22 }
 0x1b4   :  { %682 = vmatpush1.bf16.msra.mxu1 %v1076_v19  ;;  %853 = vmatprep.subr.bf16.mxu0 %v944_v26 }
 0x1b5   :  { %683 = vmatprep.subr.bf16.mxu1 %v936_v3 }
 0x1b6   :  { %635 = vmatmul.mubr.bf16.vlgmr.msra.gmra.mrb[12].mxu0 %v598_v18 }
 0x1b7   :  { %854 = vmatpush3.bf16.msra.mxu0 %v904_v44  ;;  %857 = vmatprep.mubr.msk.bf16.mxu0 %vm951_vm2, %v944_v26 }
 0x1b8   :  { %684 = vmatpush1.bf16.msra.mxu1 %v1085_v22  ;;  %855 = vmatprep.subr.bf16.mxu0 %v944_v26 }
 0x1bb   :  { %698 = vmatmul.mubr.bf16.vlgmr.msra.gmra.mrb[12].mxu1 %v661_v4  ;;  %856 = vmatpush3.bf16.msra.mxu0 %v905_v30 }
 0x1d5   :  { %v259_v19 = vpop.f32.mrb[0].mxu0 }
 0x1d6   :  { %v261_v5 = vpop.f32.mrb[1].mxu0  ;;  %v260_v8 = vadd.f32 %v826_v46, %v259_v19 }
 0x1d7   :  { %v262_v6 = vpop.f32.mrb[2].mxu0 }
 0x1d8   :  { %v263_v7 = vpop.f32.mrb[3].mxu0  ;;  %v265_v21 = vmax.f32 %v260_v8, 0.0 }
 0x1de   :  { %v321_v3 = vpop.f32.mrb[0].mxu1 }
 0x1df   :  { %v322_v9 = vadd.f32 %v826_v46, %v321_v3  ;;  %v323_v10 = vpop.f32.mrb[1].mxu1 }
 0x1e0   :  { %v324_v20 = vpop.f32.mrb[2].mxu1 }
 0x1e1   :  { %v327_v24 = vmax.f32 %v322_v9, 0.0  ;;  %v325_v25 = vpop.f32.mrb[3].mxu1 }
 0x1e3   :  { %v328_v22 = vmax.f32 %v265_v21, %v327_v24 }
 0x1fd   :  { %v384_v27 = vpop.f32.mrb[4].mxu0 }
 0x1fe   :  { %v385_v28 = vadd.f32 %v826_v46, %v384_v27  ;;  %v386_v29 = vpop.f32.mrb[5].mxu0 }
 0x1ff   :  { %v387_v31 = vpop.f32.mrb[6].mxu0 }
 0x200   :  { %v390_v32 = vmax.f32 %v385_v28, 0.0  ;;  %v388_v33 = vpop.f32.mrb[7].mxu0 }
 0x202   :  { %v391_v34 = vmax.f32 %v328_v22, %v390_v32 }
 0x206   :  { %v447_v35 = vpop.f32.mrb[4].mxu1 }
 0x207   :  { %v448_v37 = vadd.f32 %v826_v46, %v447_v35  ;;  %v449_v38 = vpop.f32.mrb[5].mxu1 }
 0x208   :  { %v450_v40 = vpop.f32.mrb[6].mxu1 }
 0x209   :  { %v453_v41 = vmax.f32 %v448_v37, 0.0  ;;  %v451_v42 = vpop.f32.mrb[7].mxu1 }
 0x20b   :  { %v454_v43 = vmax.f32 %v391_v34, %v453_v41 }
 0x261   :  { %v510_v45 = vpop.f32.mrb[8].mxu0 }
 0x262   :  { %v511_v23 = vadd.f32 %v826_v46, %v510_v45  ;;  %v512_v48 = vpop.f32.mrb[9].mxu0 }
 0x263   :  { %v513_v49 = vpop.f32.mrb[10].mxu0 }
 0x264   :  { %v516_v50 = vmax.f32 %v511_v23, 0.0  ;;  %v514_v51 = vpop.f32.mrb[11].mxu0 }
 0x266   :  { %v517_v52 = vmax.f32 %v454_v43, %v516_v50  ;;  %v573_v53 = vpop.f32.mrb[8].mxu1 }
 0x267   :  { %v574_v54 = vadd.f32 %v826_v46, %v573_v53  ;;  %v575_v55 = vpop.f32.mrb[9].mxu1 }
 0x268   :  { %v576_v56 = vpop.f32.mrb[10].mxu1 }
 0x269   :  { %v579_v57 = vmax.f32 %v574_v54, 0.0  ;;  %v577_v58 = vpop.f32.mrb[11].mxu1 }
 0x26b   :  { %v580_v59 = vmax.f32 %v517_v52, %v579_v57 }
 0x289   :  { %v636_v36 = vpop.f32.mrb[12].mxu0 }
 0x28a   :  { %v637_v60 = vadd.f32 %v826_v46, %v636_v36  ;;  %v638_v61 = vpop.f32.mrb[13].mxu0 }
 0x28b   :  { %v639_v39 = vpop.f32.mrb[14].mxu0 }
 0x28c   :  { %v642_v62 = vmax.f32 %v637_v60, 0.0  ;;  %v640_v26 = vpop.f32.mrb[15].mxu0 }
 0x28e   :  { %v643_v63 = vmax.f32 %v580_v59, %v642_v62  ;;  %v699_v11 = vpop.f32.mrb[12].mxu1 }
 0x28f   :  { %v700_v12 = vadd.f32 %v826_v46, %v699_v11  ;;  %v701_v0 = vpop.f32.mrb[13].mxu1 }
 0x290   :  { %v702_v13 = vpop.f32.mrb[14].mxu1 }
 0x291   :  { %v705_v14 = vmax.f32 %v700_v12, 0.0  ;;  %v703_v15 = vpop.f32.mrb[15].mxu1 }
 0x293   :  { %v706_v16 = vmax.f32 %v643_v63, %v705_v14 }
 0x295   :  { %v707_v17 = vpack.c.bf16 %v706_v16, %v706_v16  ;;  %789 = vrot.lane.b32.xlu1 %v706_v16, %s952_s3 }
 0x297   :  { %858 = vmatmul.mubr.msk.bf16.vlgmr.msra.gmra.mrb[16].mxu0 %vm731_vm3, %v707_v17 }
 0x307   :  { %v790_v9 = vpop.permute.xlu1 %789 }
 0x36a   :  { %v769_v18 = vpop.f32.mrb[16].mxu0 }
 0x36b   :  { %v770_v1 = vadd.f32 %v845_v47, %v769_v18  ;;  %v859_v2 = vpop.f32.mrb[17].mxu0 }
 0x36c   :  { %v772_v4 = vpop.f32.mrb[18].mxu0 }
 0x36d   :  { %v775_v19 = vmax.f32 %v770_v1, 0.0  ;;  %v860_v5 = vpop.f32.mrb[19].mxu0  ;;  %v849_v6 = vmul.f32 -1.442695, %v770_v1 }
 0x36f   :  { %783 = vrot.lane.b32.xlu0 %v775_v19, %s952_s3  ;;  %906 = vpow2.f32 %v849_v6 }
 0x379   :  { %v907_v7 = vpop.eup %906 }
 0x37a   :  { %v779_v46 = vadd.f32 1.0, %v907_v7 }
 0x37c   :  { %908 = vrcp.f32 %v779_v46 }
 0x386   :  { %v909_v8 = vpop.eup %908 }
 0x387   :  { %v787_v3 = vsub.f32 1.0, %v909_v8 }
 0x389   :  { %v792_v20 = vmul.f32 %v790_v9, %v787_v3 }
 0x3e1   :  { %v784_v10 = vpop.permute.xlu0 %783 }
 0x3e2   :  { %v786_v21 = vmul.f32 %v909_v8, %v784_v10 }
 0x3e4   :  { %v793_v24 = vadd.f32 %v792_v20, %v786_v21 }
 0x3e6   :  { %795 = vrot.lane.b32.xlu0 %v793_v24, %s953_s4 }
 0x458   :  { %v796_v25 = vpop.permute.xlu0 %795 }
 0x459   :  { %v798_v22 = vsel %vm731_vm3, %v796_v25, 0.0 }
 0x45a   :  { %799 = vst [vmem:[#allocation2] sm:$0xff] %v798_v22 }
 0x45b   :  { %921 = shalt.err (!%p918_p4)
}
 0x45c   :  { %s922_s28 = scalar_lea.hbm %s1388_s5, 128 }
 0x45d   :  { %p923_p5 = scmp.ne.s32.totalorder %s1388_s5, %s922_s28  ;;  %p926_p6 = scmp.lt.u32.totalorder %s922_s28, %s1388_s5 }
 0x45f   :  { %p928_p7 = pnand %p926_p6, %p923_p5 }
 0x461   :  { %931 = shalt.err (!%p928_p7)
}
 0x462   :  { %809 = dma.vmem_to_hbm [thread:$0]  %s807_s24, 128, %s1388_s5, [#allocation3]  }
 0x463   :  { %932 = dma.done.wait [#allocation3], 128  }
 0x464   :  { %933 = vsyncadd [#allocation3], 4294967168 }
 0x465   :  { %813 = vsyncpa [#allocation3], 1 }

</bundles_post_ra>
